<compile_context>
chip_gen: v6e
topology: v6e:2x2x1
jax: 0.10.0
libtpu: 0.0.40
codegen_flags: <defaults>
</compile_context>

<pallas_src>
import jax
import jax.numpy as jnp
from jax.experimental import pallas as pl
from jax.experimental.pallas import tpu as pltpu

EPS = 1e-6  # torch pairwise_distance default eps


def _vmem_capacity_bytes():
    """Physical VMEM per core; falls back to 128 MiB if the query fails."""
    try:
        return int(pltpu.get_tpu_info().vmem_capacity_bytes)
    except Exception:
        return 128 * 1024 * 1024


def _choose_tile_b(B, D, itemsize, vmem_cap):
    """Byte-based batch-tile sizing.

    Per resident batch row we hold: 2 operands x 2 pipeline buffers of the
    native-dtype tile plus ~3 f32 (TB, D) temporaries (upcasts + diff) inside
    the body. Target ~8 MiB per operand per tile, capped by a generation-aware
    budget (3/8 of physical VMEM), and capped again so large B gives >= 2
    tiles for the v7x megacore.
    """
    bytes_per_row = 4 * D * itemsize + 3 * D * 4
    budget = (vmem_cap * 3) // 8
    cap_rows = max(8, budget // bytes_per_row)
    target_rows = max(8, (8 * 1024 * 1024) // (D * itemsize))
    tb = min(B, cap_rows, target_rows)

    # Ensure >= 2 tiles when B is big enough (v7x: 2 TensorCores share the
    # "parallel" grid axis). Negligible cost on 1-TC chips.
    half = (((B + 1) // 2) // 8) * 8
    if half >= 8:
        tb = min(tb, half)

    if tb < B and tb % 8 != 0:  # non-full blocks need sublane multiples of 8
        tb = max(8, (tb // 8) * 8)
    return int(tb)


def _make_kernel(margin, B, TB):
    def kernel(x1_ref, x2_ref, partial_ref):
        i = pl.program_id(0)

        # Load native dtype, compute in f32.
        x1 = x1_ref[...].astype(jnp.float32)
        x2 = x2_ref[...].astype(jnp.float32)
        diff = x1 - x2 + EPS                                    # (TB, D)

        sq = jnp.sum(diff * diff, axis=-1, keepdims=True)       # (TB, 1)
        dist = jnp.sqrt(sq)                                     # EUP, once
        label = (dist < margin).astype(jnp.float32)             # torch semantics
        hinge = jnp.maximum(margin - dist, 0.0)
        per_row = (1.0 - label) * sq + label * (hinge * hinge)  # (TB, 1)

        # Mask rows past the true batch size (last tile when B % TB != 0).
        # Keep this a SELECT: padded rows may hold garbage/NaN from the block
        # tail; jnp.where discards it (a multiply-by-mask would propagate NaN).
        row = jax.lax.broadcasted_iota(jnp.int32, (TB, 1), 0) + i * TB
        per_row = jnp.where(row < B, per_row, 0.0)

        # Fused reduction: one partial sum per tile, written once into this
        # step's private (8, 128) output block at element [0, 0].
        partial = jnp.sum(per_row, axis=0, keepdims=True)        # (1, 1)
        r = jax.lax.broadcasted_iota(jnp.int32, (8, 128), 0)
        c = jax.lax.broadcasted_iota(jnp.int32, (8, 128), 1)
        partial_ref[...] = jnp.where((r == 0) & (c == 0), partial, 0.0)

    return kernel


def dynamic_contrastive_loss(output1, output2, margin: float = 1.0, *, tile_b=None):
    """Pallas TPU implementation of DynamicContrastiveLoss.forward."""
    assert output1.shape == output2.shape and output1.ndim == 2
    B, D = output1.shape
    itemsize = jnp.dtype(output1.dtype).itemsize
    vmem_cap = _vmem_capacity_bytes()

    TB = int(tile_b) if tile_b is not None else _choose_tile_b(B, D, itemsize, vmem_cap)
    assert TB == B or TB % 8 == 0, "tile_b must be the full batch or a multiple of 8"
    num_tiles = pl.cdiv(B, TB)

    # Leave headroom under physical VMEM (v7x: 48 MiB of 64; v5e/v6e: 96 of 128).
    vmem_limit = min((vmem_cap * 3) // 4, 96 * 1024 * 1024)

    kernel = _make_kernel(float(margin), B, TB)
    partials = pl.pallas_call(
        kernel,
        out_shape=jax.ShapeDtypeStruct((num_tiles * 8, 128), jnp.float32),
        grid=(num_tiles,),
        in_specs=[
            pl.BlockSpec((TB, D), lambda i: (i, 0)),
            pl.BlockSpec((TB, D), lambda i: (i, 0)),
        ],
        out_specs=pl.BlockSpec((8, 128), lambda i: (i, 0)),
        compiler_params=pltpu.CompilerParams(
            dimension_semantics=("parallel",),  # each step owns its own block
            vmem_limit_bytes=int(vmem_limit),
        ),
    )(output1, output2)

    # Every block is zero except element [0, 0] = that tile's partial sum,
    # so summing the whole (tiny) buffer and dividing by the true B gives the
    # exact batch mean.
    return jnp.sum(partials) / B


def _reference(output1, output2, margin):
    o1 = output1.astype(jnp.float32)
    o2 = output2.astype(jnp.float32)
    diff = o1 - o2 + EPS
    dist = jnp.sqrt(jnp.sum(diff * diff, axis=-1))
    label = (dist < margin).astype(jnp.float32)
    hinge = jnp.maximum(margin - dist, 0.0)
    return jnp.mean((1.0 - label) * dist**2 + label * hinge**2)


if __name__ == "__main__":
    key = jax.random.PRNGKey(0)
    k1, k2 = jax.random.split(key)
    margin = 1.0
    D = 128

    # Case 1: small aligned batch (single tile).
    B = 8
    o1 = jax.random.normal(k1, (B, D), dtype=jnp.float32)
    o2 = jax.random.normal(k2, (B, D), dtype=jnp.float32)
    loss = jax.block_until_ready(dynamic_contrastive_loss(o1, o2, margin))
    ref = _reference(o1, o2, margin)
    assert jnp.allclose(loss, ref, rtol=1e-5, atol=1e-6), (loss, ref)

    # Case 2: batch not divisible by the tile -> multi-tile grid + row masking.
    B2 = 20
    o1b = jax.random.normal(k1, (B2, D), dtype=jnp.float32)
    o2b = jax.random.normal(k2, (B2, D), dtype=jnp.float32)
    loss2 = jax.block_until_ready(
        dynamic_contrastive_loss(o1b, o2b, margin, tile_b=8))
    ref2 = _reference(o1b, o2b, margin)
    assert jnp.allclose(loss2, ref2, rtol=1e-5, atol=1e-6), (loss2, ref2)

    # Case 3: auto tiling (>=2 tiles) with bf16 inputs, f32 upcast in-kernel.
    B3 = 24
    o1c = jax.random.normal(k1, (B3, D), dtype=jnp.bfloat16)
    o2c = jax.random.normal(k2, (B3, D), dtype=jnp.bfloat16)
    loss3 = jax.block_until_ready(dynamic_contrastive_loss(o1c, o2c, margin))
    ref3 = _reference(o1c, o2c, margin)
    assert jnp.allclose(loss3, ref3, rtol=1e-3, atol=1e-4), (loss3, ref3)

    print("KERNEL_OK")
</pallas_src>

<mosaic_0001>
module attributes {stable_mosaic.version = 11 : i64} {
  func.func @kernel(%arg0: i32, %arg1: memref<8x128xf32, #tpu.memory_space<vmem>>, %arg2: memref<8x128xf32, #tpu.memory_space<vmem>>, %arg3: memref<8x128xf32, #tpu.memory_space<vmem>>) attributes {dimension_semantics = [#tpu.dimension_semantics<parallel>], iteration_bounds = array<i64: 1>, scalar_prefetch = 0 : i64, scratch_operands = 0 : i64, tpu.core_type = #tpu.core_type<tc>, window_params = [{transform_indices = @transform_0, window_bounds = array<i64: 8, 128>}, {transform_indices = @transform_1, window_bounds = array<i64: 8, 128>}, {transform_indices = @transform_2, window_bounds = array<i64: 8, 128>}]} {
    %c0 = arith.constant 0 : index
    %c0_0 = arith.constant 0 : index
    %0 = vector.load %arg1[%c0, %c0_0] : memref<8x128xf32, #tpu.memory_space<vmem>>, vector<8x128xf32>
    %c0_1 = arith.constant 0 : index
    %c0_2 = arith.constant 0 : index
    %1 = vector.load %arg2[%c0_1, %c0_2] : memref<8x128xf32, #tpu.memory_space<vmem>>, vector<8x128xf32>
    %2 = arith.subf %0, %1 : vector<8x128xf32>
    %cst = arith.constant 9.99999997E-7 : f32
    %3 = vector.broadcast %cst : f32 to vector<8x128xf32>
    %4 = arith.addf %2, %3 : vector<8x128xf32>
    %5 = arith.mulf %4, %4 : vector<8x128xf32>
    %cst_3 = arith.constant dense<0.000000e+00> : vector<8xf32>
    %6 = vector.multi_reduction <add>, %5, %cst_3 [1] : vector<8x128xf32> to vector<8xf32>
    %7 = vector.shape_cast %6 : vector<8xf32> to vector<8x1xf32>
    %8 = math.sqrt %7 : vector<8x1xf32>
    %cst_4 = arith.constant 1.000000e+00 : f32
    %9 = vector.broadcast %cst_4 : f32 to vector<8x1xf32>
    %10 = arith.cmpf olt, %8, %9 : vector<8x1xf32>
    %11 = arith.extui %10 : vector<8x1xi1> to vector<8x1xi32>
    %12 = arith.sitofp %11 : vector<8x1xi32> to vector<8x1xf32>
    %cst_5 = arith.constant 1.000000e+00 : f32
    %13 = vector.broadcast %cst_5 : f32 to vector<8x1xf32>
    %14 = arith.subf %13, %8 : vector<8x1xf32>
    %cst_6 = arith.constant 0.000000e+00 : f32
    %15 = vector.broadcast %cst_6 : f32 to vector<8x1xf32>
    %16 = arith.maximumf %14, %15 : vector<8x1xf32>
    %cst_7 = arith.constant 1.000000e+00 : f32
    %17 = vector.broadcast %cst_7 : f32 to vector<8x1xf32>
    %18 = arith.subf %17, %12 : vector<8x1xf32>
    %19 = arith.mulf %18, %7 : vector<8x1xf32>
    %20 = arith.mulf %16, %16 : vector<8x1xf32>
    %21 = arith.mulf %12, %20 : vector<8x1xf32>
    %22 = arith.addf %19, %21 : vector<8x1xf32>
    %23 = tpu.iota {dimensions = array<i32: 0>} : vector<8x1xi32>
    %c8_i32 = arith.constant 8 : i32
    %24 = arith.muli %arg0, %c8_i32 : i32
    %25 = vector.broadcast %24 : i32 to vector<8x1xi32>
    %26 = arith.addi %23, %25 : vector<8x1xi32>
    %c8_i32_8 = arith.constant 8 : i32
    %27 = vector.broadcast %c8_i32_8 : i32 to vector<8x1xi32>
    %28 = arith.cmpi slt, %26, %27 : vector<8x1xi32>
    %cst_9 = arith.constant 0.000000e+00 : f32
    %29 = vector.broadcast %cst_9 : f32 to vector<8x1xf32>
    %30 = arith.select %28, %22, %29 : vector<8x1xi1>, vector<8x1xf32>
    %cst_10 = arith.constant dense<0.000000e+00> : vector<1xf32>
    %31 = vector.multi_reduction <add>, %30, %cst_10 [0] : vector<8x1xf32> to vector<1xf32>
    %32 = vector.shape_cast %31 : vector<1xf32> to vector<1x1xf32>
    %33 = tpu.iota {dimensions = array<i32: 0>} : vector<8x128xi32>
    %34 = tpu.iota {dimensions = array<i32: 1>} : vector<8x128xi32>
    %c0_i32 = arith.constant 0 : i32
    %35 = vector.broadcast %c0_i32 : i32 to vector<8x128xi32>
    %36 = arith.cmpi eq, %33, %35 : vector<8x128xi32>
    %c0_i32_11 = arith.constant 0 : i32
    %37 = vector.broadcast %c0_i32_11 : i32 to vector<8x128xi32>
    %38 = arith.cmpi eq, %34, %37 : vector<8x128xi32>
    %39 = arith.andi %36, %38 : vector<8x128xi1>
    %cst_12 = arith.constant 0.000000e+00 : f32
    %40 = vector.shape_cast %32 : vector<1x1xf32> to vector<1x1xf32>
    %41 = vector.broadcast %40 : vector<1x1xf32> to vector<8x128xf32>
    %42 = vector.broadcast %cst_12 : f32 to vector<8x128xf32>
    %43 = arith.select %39, %41, %42 : vector<8x128xi1>, vector<8x128xf32>
    %c0_13 = arith.constant 0 : index
    %c0_14 = arith.constant 0 : index
    %44 = vector.load %arg3[%c0_13, %c0_14] : memref<8x128xf32, #tpu.memory_space<vmem>>, vector<8x128xf32>
    tpu.vector_store %arg3[%c0_13, %c0_14], %43 {strides = array<i32>} : memref<8x128xf32, #tpu.memory_space<vmem>>, vector<8x128xf32>,
    return
  }
  func.func @transform_0(%arg0: i32) -> (i32, i32) {
    %c0_i32 = arith.constant 0 : i32
    %c0_i32_0 = arith.constant 0 : i32
    return %arg0, %c0_i32 : i32, i32
  }
  func.func @transform_1(%arg0: i32) -> (i32, i32) {
    %c0_i32 = arith.constant 0 : i32
    %c0_i32_0 = arith.constant 0 : i32
    return %arg0, %c0_i32 : i32, i32
  }
  func.func @transform_2(%arg0: i32) -> (i32, i32) {
    %c0_i32 = arith.constant 0 : i32
    %c0_i32_0 = arith.constant 0 : i32
    return %arg0, %c0_i32 : i32, i32
  }
}

</mosaic_0001>

<bundles_post_ra>
// kernel: tpu_custom_call.1
= control target key start
LH: loop header
LB: loop body
LE: loop exit
PB: predicated region body
PF: predicated region fallthrough
CT: control target
= control target key end

     0   :  { %7 = vsyncpa [#allocation3], 0  ;;  %s197_s0 = inlined_call_operand.hbm [shape: f32[8,128], index: 0, kind: input, shape index: {}]   ;;  %s198_s1 = inlined_call_operand.hbm [shape: f32[8,128], index: 1, kind: input, shape index: {}]   ;;  %s199_s2 = inlined_call_operand.hbm [shape: f32[8,128], index: 2, kind: output, shape index: {}]  }
   0x1   :  { %8 = vsyncpa [#allocation6], 0 }
   0x2   :  { %9 = vsyncpa [#allocation4], 0  ;;  %s169_s9 = smov [#allocation2]   ;;  %s170_s11 = smov [#allocation5]  }
   0x3   :  { %s16_s10 = sshll.u32 %s169_s9, 4  ;;  %s26_s12 = sshll.u32 %s170_s11, 4  ;;  %s17_s10 = int_to_ptr.vmem [resolvable:$true] %s16_s10  ;;  %s27_s12 = int_to_ptr.vmem [resolvable:$true] %s26_s12 }
   0x4   :  { %s111_s13 = scalar_lea.vmem %s17_s10, 128  ;;  %p116_p1 = scmp.lt.s32.totalorder %s17_s10, %s17_s10 }
   0x5   :  { %p112_p0 = scmp.ne.s32.totalorder %s17_s10, %s111_s13  ;;  %p117_p2 = scmp.lt.s32.totalorder %s111_s13, %s111_s13 }
   0x7   :  { %p118_p3 = por %p117_p2, %p116_p1 }
   0x9   :  { %p119_p4 = pnand %p118_p3, %p112_p0 }
   0xb   :  { %122 = shalt.err (!%p119_p4)
}
   0xc   :  { %19 = dma.hbm_to_vmem [thread:$0]  %s197_s0, 128, %s17_s10, [#allocation3]  }
   0xd   :  { %s131_s16 = scalar_lea.vmem %s27_s12, 128  ;;  %p136_p6 = scmp.lt.s32.totalorder %s27_s12, %s27_s12 }
   0xe   :  { %p132_p5 = scmp.ne.s32.totalorder %s27_s12, %s131_s16  ;;  %p137_p7 = scmp.lt.s32.totalorder %s131_s16, %s131_s16 }
  0x10   :  { %p138_p8 = por %p137_p7, %p136_p6 }
  0x12   :  { %p139_p9 = pnand %p138_p8, %p132_p5 }
  0x14   :  { %142 = shalt.err (!%p139_p9)
}
  0x15   :  { %29 = dma.hbm_to_vmem [thread:$0]  %s198_s1, 128, %s27_s12, [#allocation6]  }
  0x16   :  { %163 = dma.done.wait [#allocation3], 128  }
  0x17   :  { %164 = vsyncadd [#allocation3], 4294967168 }
  0x18   :  { %165 = dma.done.wait [#allocation6], 128  }
  0x19   :  { %166 = vsyncadd [#allocation6], 4294967168  ;;  %v36_v0 = vld [vmem:[#allocation2] sm:$0xff]  ;;  %v37_v1 = vld [vmem:[#allocation5] sm:$0xff]  ;;  %v171_v12 = vmov 0.0   ;;  %v60_v20 = vlaneseq  ;;  %s172_s0 = smov [#allocation7]  }
  0x1a   :  { %v38_v2 = vsub.f32 %v36_v0, %v37_v1  ;;  %s86_s1 = sshll.u32 %s172_s0, 4  ;;  %s87_s1 = int_to_ptr.vmem [resolvable:$true] %s86_s1 }
  0x1b   :  { %v61_v22 = vshrl.u32 %v60_v20, 7  ;;  %v74_v24 = vand.u32 127, %v60_v20  ;;  %s143_s19 = scalar_lea.vmem %s87_s1, 128  ;;  %p148_p11 = scmp.lt.s32.totalorder %s87_s1, %s87_s1 }
  0x1c   :  { %v39_v3 = vadd.f32 1e-06, %v38_v2  ;;  %p144_p10 = scmp.ne.s32.totalorder %s87_s1, %s143_s19  ;;  %p149_p12 = scmp.lt.s32.totalorder %s143_s19, %s143_s19 }
  0x1d   :  { %vm75_vm3 = vcmp.eq.s32.totalorder %v61_v22, 0  ;;  %vm76_vm4 = vcmp.eq.s32.totalorder %v74_v24, 0 }
  0x1e   :  { %v40_v4 = vmul.f32 %v39_v3, %v39_v3  ;;  %vm77_vm5 = vmand %vm75_vm3, %vm76_vm4  ;;  %p150_p13 = por %p149_p12, %p148_p11 }
  0x20   :  { %41 = vadd.xlane.f32.xlu0 %v40_v4  ;;  %p151_p0 = pnand %p150_p13, %p144_p10 }
  0xa9   :  { %v42_v5 = vpop.xlane.xlu0 %41 }
  0xaa   :  { %101 = vrsqrt.f32 %v42_v5  ;;  %vm45_vm0 = vcmp.eq.f32.partialorder %v42_v5, inf  ;;  %v48_v8 = vand.u32 2147483648, %v42_v5  ;;  %vm47_vm1 = vcmp.eq.f32.partialorder %v42_v5, 0.0 }
  0xb7   :  { %v102_v6 = vpop.eup %101 }
  0xb8   :  { %v44_v7 = vmul.f32 %v102_v6, %v42_v5 }
  0xba   :  { %v46_v9 = vsel %vm45_vm0, %v42_v5, %v44_v7 }
  0xbb   :  { %v49_v10 = vsel %vm47_vm1, %v48_v8, %v46_v9 }
  0xbc   :  { %vm50_vm2 = vcmp.lt.f32.partialorder %v49_v10, 1.0  ;;  %v53_v11 = vsub.f32 1.0, %v49_v10 }
  0xbd   :  { %v96_v13 = vsel %vm50_vm2, 1.0, %v171_v12 }
  0xbe   :  { %v55_v14 = vsub.f32 1.0, %v96_v13  ;;  %v54_v15 = vmax.f32 %v53_v11, 0.0 }
  0xc0   :  { %v57_v16 = vmul.f32 %v54_v15, %v54_v15  ;;  %v56_v17 = vmul.f32 %v55_v14, %v42_v5 }
  0xc2   :  { %v58_v18 = vmul.f32 %v96_v13, %v57_v16 }
  0xc4   :  { %v59_v19 = vadd.f32 %v58_v18, %v56_v17 }
  0xc6   :  { %v67_v21 = vrot.slane %v59_v19, 4 }
  0xc8   :  { %v68_v23 = vadd.f32 %v67_v21, %v59_v19 }
  0xca   :  { %v69_v25 = vrot.slane %v68_v23, 2 }
  0xcc   :  { %v70_v26 = vadd.f32 %v69_v25, %v68_v23 }
  0xce   :  { %v71_v27 = vrot.slane %v70_v26, 1 }
  0xd0   :  { %v72_v28 = vadd.f32 %v71_v27, %v70_v26 }
  0xd2   :  { %v78_v29 = vsel %vm77_vm5, %v72_v28, 0.0 }
  0xd3   :  { %79 = vst [vmem:[#allocation7] sm:$0xff] %v78_v29 }
  0xd4   :  { %154 = shalt.err (!%p151_p0)
}
  0xd5   :  { %89 = dma.vmem_to_hbm [thread:$0]  %s87_s1, 128, %s199_s2, [#allocation4]  }
  0xd6   :  { %167 = dma.done.wait [#allocation4], 128  }
  0xd7   :  { %168 = vsyncadd [#allocation4], 4294967168 }
  0xd8   :  { %93 = vsyncpa [#allocation3], 1 }
  0xd9   :  { %94 = vsyncpa [#allocation6], 1 }
  0xda   :  { %95 = vsyncpa [#allocation4], 1 }

</bundles_post_ra>
